<compile_context>
chip_gen: v5e
topology: v5e:2x2
jax: 0.10.0
libtpu: 0.0.40
codegen_flags: <defaults>
</compile_context>

<pallas_src>
import functools

import jax
import jax.numpy as jnp
from jax.experimental import pallas as pl
from jax.experimental.pallas import tpu as pltpu


def _round_up(v, m):
    return ((v + m - 1) // m) * m


def global_block_kernel(e_ref, egid_ref, x_ref, ngid_ref, u_ref,
                        we_ref, wn_ref, wu_ref, b_ref, o_ref,
                        acc_e_ref, acc_n_ref, *, T_e):
    t = pl.program_id(0)
    G = acc_e_ref.shape[0]

    @pl.when(t == 0)
    def _():
        acc_e_ref[...] = jnp.zeros_like(acc_e_ref)
        acc_n_ref[...] = jnp.zeros_like(acc_n_ref)

    # ---- edge-aggregation phase: segment-sum via one-hot mask on the MXU ----
    @pl.when(t < T_e)
    def _():
        tile = e_ref.shape[0]
        gid = egid_ref[...]                                           # (1, tile)
        graphs = jax.lax.broadcasted_iota(jnp.int32, (G, tile), 0)    # (G, tile)
        mask = (graphs == gid).astype(jnp.float32)                    # one-hot
        acc_e_ref[...] += jnp.dot(mask, e_ref[...].astype(jnp.float32),
                                  preferred_element_type=jnp.float32)

    # ---- node-aggregation phase ----
    @pl.when(t >= T_e)
    def _():
        tile = x_ref.shape[0]
        gid = ngid_ref[...]
        graphs = jax.lax.broadcasted_iota(jnp.int32, (G, tile), 0)
        mask = (graphs == gid).astype(jnp.float32)
        acc_n_ref[...] += jnp.dot(mask, x_ref[...].astype(jnp.float32),
                                  preferred_element_type=jnp.float32)

    # ---- finalize: Linear(concat([agg_e, agg_n, u])) as W split on input dim.
    # Runs exactly once per call, so splitting W costs nothing vs. one fused dot.
    @pl.when(t == pl.num_programs(0) - 1)
    def _():
        out = jnp.dot(acc_e_ref[...], we_ref[...],
                      preferred_element_type=jnp.float32)
        out = out + jnp.dot(acc_n_ref[...], wn_ref[...],
                            preferred_element_type=jnp.float32)
        out = out + jnp.dot(u_ref[...].astype(jnp.float32), wu_ref[...],
                            preferred_element_type=jnp.float32)
        o_ref[...] = (out + b_ref[...]).astype(o_ref.dtype)


@functools.partial(jax.jit, static_argnames=("tile_rows",))
def global_block_forward(e, x, u, edge_gid, node_gid, W, b, *, tile_rows=512):
    """GlobalBlock forward (sum reducers, nn.Linear net).

    e        : [E, De]   edge features (batched graph)
    x        : [N, Dn]   node features
    u        : [G, Dg]   per-graph global features
    edge_gid : [E] int32 graph id of each edge
    node_gid : [N] int32 graph id of each node
    W        : [Do, De + Dn + Dg]  (PyTorch nn.Linear layout: [out, in])
    b        : [Do]
    """
    E, De = e.shape
    N, Dn = x.shape
    G, Dg = u.shape
    Do, Din = W.shape
    assert Din == De + Dn + Dg
    assert tile_rows % 128 == 0

    # MXU/lane-aligned row tile, clamped for tiny inputs.
    tile = min(tile_rows, _round_up(max(E, N), 128))
    T_e = pl.cdiv(E, tile)
    T_n = pl.cdiv(N, tile)
    E_pad = T_e * tile
    N_pad = T_n * tile
    Do_pad = _round_up(Do, 128)      # lane-dense output / weight columns

    # Pad ragged tails to whole tiles; padded rows carry graph id -1 so the
    # one-hot mask zeroes them out.
    e_p = jnp.pad(e, ((0, E_pad - E), (0, 0)))
    x_p = jnp.pad(x, ((0, N_pad - N), (0, 0)))
    egid_p = jnp.pad(edge_gid.astype(jnp.int32), (0, E_pad - E),
                     constant_values=-1).reshape(1, E_pad)
    ngid_p = jnp.pad(node_gid.astype(jnp.int32), (0, N_pad - N),
                     constant_values=-1).reshape(1, N_pad)

    # Split / transpose / pad the Linear weight: [Do, Din] -> [Din, Do_pad].
    Wt = jnp.pad(W.T, ((0, 0), (0, Do_pad - Do)))
    we = Wt[:De]                     # [De, Do_pad]
    wn = Wt[De:De + Dn]              # [Dn, Do_pad]
    wu = Wt[De + Dn:]                # [Dg, Do_pad]
    b_p = jnp.pad(b, (0, Do_pad - Do)).reshape(1, Do_pad)

    grid = (T_e + T_n,)
    kernel = functools.partial(global_block_kernel, T_e=T_e)

    out_pad = pl.pallas_call(
        kernel,
        out_shape=jax.ShapeDtypeStruct((G, Do_pad), e.dtype),
        grid_spec=pltpu.PrefetchScalarGridSpec(
            num_scalar_prefetch=0,
            grid=grid,
            in_specs=[
                # Edge-phase inputs: clamp so the last edge tile stays resident
                # (no re-DMA) during the node phase.
                pl.BlockSpec((tile, De), lambda t: (jnp.minimum(t, T_e - 1), 0)),
                pl.BlockSpec((1, tile), lambda t: (0, jnp.minimum(t, T_e - 1))),
                # Node-phase inputs: clamp to tile 0 during the edge phase.
                pl.BlockSpec((tile, Dn), lambda t: (jnp.maximum(t - T_e, 0), 0)),
                pl.BlockSpec((1, tile), lambda t: (0, jnp.maximum(t - T_e, 0))),
                # Grid-invariant blocks (DMA'd once).
                pl.BlockSpec((G, Dg), lambda t: (0, 0)),
                pl.BlockSpec((De, Do_pad), lambda t: (0, 0)),
                pl.BlockSpec((Dn, Do_pad), lambda t: (0, 0)),
                pl.BlockSpec((Dg, Do_pad), lambda t: (0, 0)),
                pl.BlockSpec((1, Do_pad), lambda t: (0, 0)),
            ],
            out_specs=pl.BlockSpec((G, Do_pad), lambda t: (0, 0)),
            scratch_shapes=[
                pltpu.VMEM((G, De), jnp.float32),   # per-graph edge aggregate
                pltpu.VMEM((G, Dn), jnp.float32),   # per-graph node aggregate
            ],
        ),
        compiler_params=pltpu.CompilerParams(
            dimension_semantics=("arbitrary",)),    # sequential reduction
    )(e_p, egid_p, x_p, ngid_p, u, we, wn, wu, b_p)

    return out_pad[:, :Do]


def reference_forward(e, x, u, edge_gid, node_gid, W, b, num_graphs):
    agg_e = jax.ops.segment_sum(e, edge_gid, num_segments=num_graphs)
    agg_n = jax.ops.segment_sum(x, node_gid, num_segments=num_graphs)
    cat = jnp.concatenate([agg_e, agg_n, u], axis=-1)
    return cat @ W.T + b


if __name__ == "__main__":
    # Small synthetic batched graph: 2 graphs.
    G = 2
    nodes_per_graph = (8, 8)        # N = 16
    edges_per_graph = (20, 12)      # E = 32
    N = sum(nodes_per_graph)
    E = sum(edges_per_graph)
    Dn, De, Dg, Do = 12, 8, 4, 32
    in_feats = De + Dn + Dg         # 24

    node_gid = jnp.concatenate([jnp.full((n,), g, dtype=jnp.int32)
                                for g, n in enumerate(nodes_per_graph)])
    edge_gid = jnp.concatenate([jnp.full((m,), g, dtype=jnp.int32)
                                for g, m in enumerate(edges_per_graph)])

    key = jax.random.PRNGKey(0)
    k_e, k_x, k_u, k_w, k_b = jax.random.split(key, 5)

    e = jax.random.normal(k_e, (E, De), dtype=jnp.float32)
    x = jax.random.normal(k_x, (N, Dn), dtype=jnp.float32)
    u = jax.random.normal(k_u, (G, Dg), dtype=jnp.float32)

    # Deterministic nn.Linear-style init: U(-k, k), k = 1/sqrt(in_feats).
    bound = 1.0 / (in_feats ** 0.5)
    W = jax.random.uniform(k_w, (Do, in_feats), minval=-bound, maxval=bound,
                           dtype=jnp.float32)
    b = jax.random.uniform(k_b, (Do,), minval=-bound, maxval=bound,
                           dtype=jnp.float32)

    out = global_block_forward(e, x, u, edge_gid, node_gid, W, b, tile_rows=512)
    out = jax.block_until_ready(out)

    ref = reference_forward(e, x, u, edge_gid, node_gid, W, b, G)
    assert out.shape == (G, Do)
    assert jnp.allclose(out, ref, atol=1e-5, rtol=1e-5), "mismatch vs reference"

    # TODO(synk): 'mean'/'max' reducers and the custom_func branch are not
    # exercised (module defaults are sum reducers + nn.Linear).
    print("KERNEL_OK")
</pallas_src>

<mosaic_0001>
module attributes {stable_mosaic.version = 11 : i64} {
  func.func @global_block_kernel(%arg0: i32, %arg1: memref<128x8xf32, #tpu.memory_space<vmem>>, %arg2: memref<1x128xi32, #tpu.memory_space<vmem>>, %arg3: memref<128x12xf32, #tpu.memory_space<vmem>>, %arg4: memref<1x128xi32, #tpu.memory_space<vmem>>, %arg5: memref<2x4xf32, #tpu.memory_space<vmem>>, %arg6: memref<8x128xf32, #tpu.memory_space<vmem>>, %arg7: memref<12x128xf32, #tpu.memory_space<vmem>>, %arg8: memref<4x128xf32, #tpu.memory_space<vmem>>, %arg9: memref<1x128xf32, #tpu.memory_space<vmem>>, %arg10: memref<2x128xf32, #tpu.memory_space<vmem>>, %arg11: memref<2x8xf32, #tpu.memory_space<vmem>>, %arg12: memref<2x12xf32, #tpu.memory_space<vmem>>) attributes {dimension_semantics = [#tpu.dimension_semantics<arbitrary>], iteration_bounds = array<i64: 2>, scalar_prefetch = 0 : i64, scratch_operands = 2 : i64, tpu.core_type = #tpu.core_type<tc>, window_params = [{transform_indices = @transform_0, window_bounds = array<i64: 128, 8>}, {transform_indices = @transform_1, window_bounds = array<i64: 1, 128>}, {transform_indices = @transform_2, window_bounds = array<i64: 128, 12>}, {transform_indices = @transform_3, window_bounds = array<i64: 1, 128>}, {pipeline_mode = #tpu.pipeline_mode<synchronous>, transform_indices = @transform_4, window_bounds = array<i64: 2, 4>}, {pipeline_mode = #tpu.pipeline_mode<synchronous>, transform_indices = @transform_5, window_bounds = array<i64: 8, 128>}, {pipeline_mode = #tpu.pipeline_mode<synchronous>, transform_indices = @transform_6, window_bounds = array<i64: 12, 128>}, {pipeline_mode = #tpu.pipeline_mode<synchronous>, transform_indices = @transform_7, window_bounds = array<i64: 4, 128>}, {pipeline_mode = #tpu.pipeline_mode<synchronous>, transform_indices = @transform_8, window_bounds = array<i64: 1, 128>}, {pipeline_mode = #tpu.pipeline_mode<synchronous>, transform_indices = @transform_9, window_bounds = array<i64: 2, 128>}]} {
    %c0_i32 = arith.constant 0 : i32
    %0 = arith.cmpi eq, %arg0, %c0_i32 : i32
    %1 = arith.extui %0 : i1 to i32
    %c0_i32_0 = arith.constant 0 : i32
    %2 = arith.cmpi ne, %1, %c0_i32_0 : i32
    scf.if %2 {
      %cst = arith.constant 0.000000e+00 : f32
      %12 = vector.broadcast %cst : f32 to vector<2x8xf32>
      %c0 = arith.constant 0 : index
      %c0_6 = arith.constant 0 : index
      %13 = vector.load %arg11[%c0, %c0_6] : memref<2x8xf32, #tpu.memory_space<vmem>>, vector<2x8xf32>
      tpu.vector_store %arg11[%c0, %c0_6], %12 {strides = array<i32>} : memref<2x8xf32, #tpu.memory_space<vmem>>, vector<2x8xf32>,
      %cst_7 = arith.constant 0.000000e+00 : f32
      %14 = vector.broadcast %cst_7 : f32 to vector<2x12xf32>
      %c0_8 = arith.constant 0 : index
      %c0_9 = arith.constant 0 : index
      %15 = vector.load %arg12[%c0_8, %c0_9] : memref<2x12xf32, #tpu.memory_space<vmem>>, vector<2x12xf32>
      tpu.vector_store %arg12[%c0_8, %c0_9], %14 {strides = array<i32>} : memref<2x12xf32, #tpu.memory_space<vmem>>, vector<2x12xf32>,
    } else {
    }
    %c1_i32 = arith.constant 1 : i32
    %3 = arith.cmpi slt, %arg0, %c1_i32 : i32
    %4 = arith.extui %3 : i1 to i32
    %c0_i32_1 = arith.constant 0 : i32
    %5 = arith.cmpi ne, %4, %c0_i32_1 : i32
    scf.if %5 {
      %c0 = arith.constant 0 : index
      %c0_6 = arith.constant 0 : index
      %12 = vector.load %arg2[%c0, %c0_6] : memref<1x128xi32, #tpu.memory_space<vmem>>, vector<1x128xi32>
      %13 = tpu.iota {dimensions = array<i32: 0>} : vector<2x128xi32>
      %14 = vector.broadcast %12 : vector<1x128xi32> to vector<2x128xi32>
      %15 = arith.cmpi eq, %13, %14 : vector<2x128xi32>
      %16 = arith.extui %15 : vector<2x128xi1> to vector<2x128xi32>
      %17 = arith.sitofp %16 : vector<2x128xi32> to vector<2x128xf32>
      %c0_7 = arith.constant 0 : index
      %c0_8 = arith.constant 0 : index
      %18 = vector.load %arg11[%c0_7, %c0_8] : memref<2x8xf32, #tpu.memory_space<vmem>>, vector<2x8xf32>
      %c0_9 = arith.constant 0 : index
      %c0_10 = arith.constant 0 : index
      %19 = vector.load %arg1[%c0_9, %c0_10] : memref<128x8xf32, #tpu.memory_space<vmem>>, vector<128x8xf32>
      %cst = arith.constant dense<0.000000e+00> : vector<2x8xf32>
      %20 = tpu.matmul %17, %19, %cst {dimension_numbers = #tpu.dot_dimension_numbers<[1], [0], [0], [1], [0, 0, 1, 1], [], []>} : vector<2x128xf32>, vector<128x8xf32>, vector<2x8xf32> -> vector<2x8xf32>
      %21 = arith.addf %18, %20 : vector<2x8xf32>
      %c0_11 = arith.constant 0 : index
      %c0_12 = arith.constant 0 : index
      %22 = vector.load %arg11[%c0_11, %c0_12] : memref<2x8xf32, #tpu.memory_space<vmem>>, vector<2x8xf32>
      tpu.vector_store %arg11[%c0_11, %c0_12], %21 {strides = array<i32>} : memref<2x8xf32, #tpu.memory_space<vmem>>, vector<2x8xf32>,
    } else {
    }
    %c1_i32_2 = arith.constant 1 : i32
    %6 = arith.cmpi sge, %arg0, %c1_i32_2 : i32
    %7 = arith.extui %6 : i1 to i32
    %c0_i32_3 = arith.constant 0 : i32
    %8 = arith.cmpi ne, %7, %c0_i32_3 : i32
    scf.if %8 {
      %c0 = arith.constant 0 : index
      %c0_6 = arith.constant 0 : index
      %12 = vector.load %arg4[%c0, %c0_6] : memref<1x128xi32, #tpu.memory_space<vmem>>, vector<1x128xi32>
      %13 = tpu.iota {dimensions = array<i32: 0>} : vector<2x128xi32>
      %14 = vector.broadcast %12 : vector<1x128xi32> to vector<2x128xi32>
      %15 = arith.cmpi eq, %13, %14 : vector<2x128xi32>
      %16 = arith.extui %15 : vector<2x128xi1> to vector<2x128xi32>
      %17 = arith.sitofp %16 : vector<2x128xi32> to vector<2x128xf32>
      %c0_7 = arith.constant 0 : index
      %c0_8 = arith.constant 0 : index
      %18 = vector.load %arg12[%c0_7, %c0_8] : memref<2x12xf32, #tpu.memory_space<vmem>>, vector<2x12xf32>
      %c0_9 = arith.constant 0 : index
      %c0_10 = arith.constant 0 : index
      %19 = vector.load %arg3[%c0_9, %c0_10] : memref<128x12xf32, #tpu.memory_space<vmem>>, vector<128x12xf32>
      %cst = arith.constant dense<0.000000e+00> : vector<2x12xf32>
      %20 = tpu.matmul %17, %19, %cst {dimension_numbers = #tpu.dot_dimension_numbers<[1], [0], [0], [1], [0, 0, 1, 1], [], []>} : vector<2x128xf32>, vector<128x12xf32>, vector<2x12xf32> -> vector<2x12xf32>
      %21 = arith.addf %18, %20 : vector<2x12xf32>
      %c0_11 = arith.constant 0 : index
      %c0_12 = arith.constant 0 : index
      %22 = vector.load %arg12[%c0_11, %c0_12] : memref<2x12xf32, #tpu.memory_space<vmem>>, vector<2x12xf32>
      tpu.vector_store %arg12[%c0_11, %c0_12], %21 {strides = array<i32>} : memref<2x12xf32, #tpu.memory_space<vmem>>, vector<2x12xf32>,
    } else {
    }
    %c1_i32_4 = arith.constant 1 : i32
    %9 = arith.cmpi eq, %arg0, %c1_i32_4 : i32
    %10 = arith.extui %9 : i1 to i32
    %c0_i32_5 = arith.constant 0 : i32
    %11 = arith.cmpi ne, %10, %c0_i32_5 : i32
    scf.if %11 {
      %c0 = arith.constant 0 : index
      %c0_6 = arith.constant 0 : index
      %12 = vector.load %arg11[%c0, %c0_6] : memref<2x8xf32, #tpu.memory_space<vmem>>, vector<2x8xf32>
      %c0_7 = arith.constant 0 : index
      %c0_8 = arith.constant 0 : index
      %13 = vector.load %arg6[%c0_7, %c0_8] : memref<8x128xf32, #tpu.memory_space<vmem>>, vector<8x128xf32>
      %cst = arith.constant dense<0.000000e+00> : vector<2x128xf32>
      %14 = tpu.matmul %12, %13, %cst {dimension_numbers = #tpu.dot_dimension_numbers<[1], [0], [0], [1], [0, 0, 1, 1], [], []>} : vector<2x8xf32>, vector<8x128xf32>, vector<2x128xf32> -> vector<2x128xf32>
      %c0_9 = arith.constant 0 : index
      %c0_10 = arith.constant 0 : index
      %15 = vector.load %arg12[%c0_9, %c0_10] : memref<2x12xf32, #tpu.memory_space<vmem>>, vector<2x12xf32>
      %c0_11 = arith.constant 0 : index
      %c0_12 = arith.constant 0 : index
      %16 = vector.load %arg7[%c0_11, %c0_12] : memref<12x128xf32, #tpu.memory_space<vmem>>, vector<12x128xf32>
      %cst_13 = arith.constant dense<0.000000e+00> : vector<2x128xf32>
      %17 = tpu.matmul %15, %16, %cst_13 {dimension_numbers = #tpu.dot_dimension_numbers<[1], [0], [0], [1], [0, 0, 1, 1], [], []>} : vector<2x12xf32>, vector<12x128xf32>, vector<2x128xf32> -> vector<2x128xf32>
      %18 = arith.addf %14, %17 : vector<2x128xf32>
      %c0_14 = arith.constant 0 : index
      %c0_15 = arith.constant 0 : index
      %19 = vector.load %arg5[%c0_14, %c0_15] : memref<2x4xf32, #tpu.memory_space<vmem>>, vector<2x4xf32>
      %c0_16 = arith.constant 0 : index
      %c0_17 = arith.constant 0 : index
      %20 = vector.load %arg8[%c0_16, %c0_17] : memref<4x128xf32, #tpu.memory_space<vmem>>, vector<4x128xf32>
      %cst_18 = arith.constant dense<0.000000e+00> : vector<2x128xf32>
      %21 = tpu.matmul %19, %20, %cst_18 {dimension_numbers = #tpu.dot_dimension_numbers<[1], [0], [0], [1], [0, 0, 1, 1], [], []>} : vector<2x4xf32>, vector<4x128xf32>, vector<2x128xf32> -> vector<2x128xf32>
      %22 = arith.addf %18, %21 : vector<2x128xf32>
      %c0_19 = arith.constant 0 : index
      %c0_20 = arith.constant 0 : index
      %23 = vector.load %arg9[%c0_19, %c0_20] : memref<1x128xf32, #tpu.memory_space<vmem>>, vector<1x128xf32>
      %24 = vector.broadcast %23 : vector<1x128xf32> to vector<2x128xf32>
      %25 = arith.addf %22, %24 : vector<2x128xf32>
      %c0_21 = arith.constant 0 : index
      %c0_22 = arith.constant 0 : index
      %26 = vector.load %arg10[%c0_21, %c0_22] : memref<2x128xf32, #tpu.memory_space<vmem>>, vector<2x128xf32>
      tpu.vector_store %arg10[%c0_21, %c0_22], %25 {strides = array<i32>} : memref<2x128xf32, #tpu.memory_space<vmem>>, vector<2x128xf32>,
    } else {
    }
    return
  }
  func.func @transform_0(%arg0: i32) -> (i32, i32) {
    %c0_i32 = arith.constant 0 : i32
    %0 = arith.minsi %arg0, %c0_i32 : i32
    %c0_i32_0 = arith.constant 0 : i32
    %c0_i32_1 = arith.constant 0 : i32
    return %0, %c0_i32_0 : i32, i32
  }
  func.func @transform_1(%arg0: i32) -> (i32, i32) {
    %c0_i32 = arith.constant 0 : i32
    %0 = arith.minsi %arg0, %c0_i32 : i32
    %c0_i32_0 = arith.constant 0 : i32
    %c0_i32_1 = arith.constant 0 : i32
    return %c0_i32_0, %0 : i32, i32
  }
  func.func @transform_2(%arg0: i32) -> (i32, i32) {
    %c1_i32 = arith.constant 1 : i32
    %0 = arith.subi %arg0, %c1_i32 : i32
    %c0_i32 = arith.constant 0 : i32
    %1 = arith.maxsi %0, %c0_i32 : i32
    %c0_i32_0 = arith.constant 0 : i32
    %c0_i32_1 = arith.constant 0 : i32
    return %1, %c0_i32_0 : i32, i32
  }
  func.func @transform_3(%arg0: i32) -> (i32, i32) {
    %c1_i32 = arith.constant 1 : i32
    %0 = arith.subi %arg0, %c1_i32 : i32
    %c0_i32 = arith.constant 0 : i32
    %1 = arith.maxsi %0, %c0_i32 : i32
    %c0_i32_0 = arith.constant 0 : i32
    %c0_i32_1 = arith.constant 0 : i32
    return %c0_i32_0, %1 : i32, i32
  }
  func.func @transform_4(%arg0: i32) -> (i32, i32) {
    %c0_i32 = arith.constant 0 : i32
    %c0_i32_0 = arith.constant 0 : i32
    %c0_i32_1 = arith.constant 0 : i32
    return %c0_i32, %c0_i32_0 : i32, i32
  }
  func.func @transform_5(%arg0: i32) -> (i32, i32) {
    %c0_i32 = arith.constant 0 : i32
    %c0_i32_0 = arith.constant 0 : i32
    %c0_i32_1 = arith.constant 0 : i32
    return %c0_i32, %c0_i32_0 : i32, i32
  }
  func.func @transform_6(%arg0: i32) -> (i32, i32) {
    %c0_i32 = arith.constant 0 : i32
    %c0_i32_0 = arith.constant 0 : i32
    %c0_i32_1 = arith.constant 0 : i32
    return %c0_i32, %c0_i32_0 : i32, i32
  }
  func.func @transform_7(%arg0: i32) -> (i32, i32) {
    %c0_i32 = arith.constant 0 : i32
    %c0_i32_0 = arith.constant 0 : i32
    %c0_i32_1 = arith.constant 0 : i32
    return %c0_i32, %c0_i32_0 : i32, i32
  }
  func.func @transform_8(%arg0: i32) -> (i32, i32) {
    %c0_i32 = arith.constant 0 : i32
    %c0_i32_0 = arith.constant 0 : i32
    %c0_i32_1 = arith.constant 0 : i32
    return %c0_i32, %c0_i32_0 : i32, i32
  }
  func.func @transform_9(%arg0: i32) -> (i32, i32) {
    %c0_i32 = arith.constant 0 : i32
    %c0_i32_0 = arith.constant 0 : i32
    %c0_i32_1 = arith.constant 0 : i32
    return %c0_i32, %c0_i32_0 : i32, i32
  }
}

</mosaic_0001>

<bundles_post_ra>
// kernel: global_block_forward.1
= control target key start
LH: loop header
LB: loop body
LE: loop exit
PB: predicated region body
PF: predicated region fallthrough
CT: control target
= control target key end

     0   :  { %14 = vsyncpa [#allocation5], 0  ;;  %s880_s30 = smov 0   ;;  %s978_s0 = inlined_call_operand.vmem [shape: f32[128,8], index: 0, kind: input, shape index: {}]   ;;  %s979_s1 = inlined_call_operand.vmem [shape: s32[1,128], index: 1, kind: input, shape index: {}]   ;;  %s980_s2 = inlined_call_operand.vmem [shape: f32[128,12], index: 2, kind: input, shape index: {}]   ;;  %s981_s3 = inlined_call_operand.vmem [shape: s32[1,128], index: 3, kind: input, shape index: {}]   ;;  %s982_s4 = inlined_call_operand.vmem [shape: f32[2,4], index: 4, kind: input, shape index: {}]   ;;  %s983_s5 = inlined_call_operand.vmem [shape: f32[8,128], index: 5, kind: input, shape index: {}]   ;;  %s984_s6 = inlined_call_operand.vmem [shape: f32[12,128], index: 6, kind: input, shape index: {}]   ;;  %s985_s7 = inlined_call_operand.vmem [shape: f32[4,128], index: 7, kind: input, shape index: {}]   ;;  %s986_s8 = inlined_call_operand.vmem [shape: f32[1,128], index: 8, kind: input, shape index: {}]   ;;  %s987_s9 = inlined_call_operand.hbm [shape: f32[2,128], index: 9, kind: output, shape index: {}]  }
   0x1 LB: > { %s886_s10 = sadd.s32 4294967295, %s824_s30   ;;  %p733_p0 = scmp.ge.s32.totalorder %s824_s30, 1  ;;  %s824_s30 = sphi %s880_s30, %s20_s30  }
   0x2   : > { %p351_p1 = scmp.lt.s32.totalorder %s824_s30, 3 }
   0x4   : > { %p352_p2 = pnand %p733_p0, %p351_p1 }
   0x5   : > { %p403_p3 = scmp.lt.s32.totalorder (!%p352_p2), %s886_s10, 0  ;;  %s739_s11 = sadd.s32 (!%p352_p2), 4294967295, %s886_s10 }
   0x6   : > { %355 = sbr.rel (%p352_p2) target bundleno = 511 (0x1ff), region = 56  ;;  %p421_p4 = scmp.gt.s32.totalorder (!%p352_p2), %s739_s11, 0 }
   0x7   : > { %p748_p7 = scmp.ne.s32.totalorder (!%p352_p2), %s886_s10, 0 }
   0xb   : > { %s404_s12 = scalar_select %p403_p3, %s886_s10, 0 }
   0xc   : > { %s989_s11 = smov (!%p421_p4, %s739_s11), 0 }
   0xd   : > { %s734_s13 = sshll.u32 %s404_s12, 4  ;;  %s740_s14 = sshll.u32 %s989_s11, 4 }
   0xe   : > { %p406_p5 = scmp.lt.s32.totalorder %s734_s13, 15  ;;  %s991_s12 = smov (!%p403_p3, %s404_s12), 0 }
   0xf   : > { %s417_s17 = scalar_lea.vmem %s979_s1, %s991_s12  ;;  %p424_p6 = scmp.lt.s32.totalorder %s740_s14, 15 }
  0x10   : > { %s993_s13 = smov (!%p406_p5, %s734_s13), 15  ;;  %444 = sbr.rel (%p748_p7) target bundleno = 24 (0x18), region = 60 }
  0x11   : > { %s735_s18 = sshll.u32 %s993_s13, 3  ;;  %s995_s14 = smov (!%p424_p6, %s740_s14), 15 }
  0x12   : > { %s902_s21 = scalar_lea.vmem %s978_s0, %s735_s18  ;;  %s741_s22 = sshll.u32 %s995_s14, 3 }
  0x13   : > { %s907_s25 = scalar_lea.vmem %s980_s2, %s741_s22 }
  0x15   : > { %vm445_vm0 = vcmask 58368   ;;  %vm447_vm1 = vcmask 91136   ;;  %v826_v0 = vmov 0.0  }
  0x16   : > { %446 = vst.msk [vmem:[#allocation2] sm:$0x3] %vm445_vm0, %v826_v0 }
  0x17   : > { %448 = vst.msk [vmem:[#allocation3] sm:$0x3] %vm447_vm1, %v826_v0 }
  0x18 PF: > { %p749_p8 = scmp.ge.s32.totalorder %s886_s10, 1 }
  0x1a   : > { %452 = sbr.rel (%p749_p8) target bundleno = 192 (0xc0), region = 64 }
  0x1f   : > { %v476_v1 = vld [vmem:[%s902_s21 + $0x78] sm:$0xff]  ;;  %v475_v2 = vld [vmem:[%s902_s21 + $0x70] sm:$0xff]  ;;  %v474_v3 = vld [vmem:[%s902_s21 + $0x68] sm:$0xff]  ;;  %v454_v13 = vlaneseq  ;;  %v827_v20 = vmov 1.0   ;;  %vm498_vm3 = vcmask 58368  }
  0x20   : > { %477 = vmatpush.msra.mxu0 %v476_v1  ;;  %v473_v4 = vld [vmem:[%s902_s21 + $0x60] sm:$0xff]  ;;  %v472_v5 = vld [vmem:[%s902_s21 + $0x58] sm:$0xff]  ;;  %v471_v6 = vld [vmem:[%s902_s21 + $0x50] sm:$0xff] }
  0x21   : > { %v470_v7 = vld [vmem:[%s902_s21 + $0x48] sm:$0xff]  ;;  %v469_v8 = vld [vmem:[%s902_s21 + $0x40] sm:$0xff]  ;;  %v468_v9 = vld [vmem:[%s902_s21 + $0x38] sm:$0xff]  ;;  %v455_v16 = vshrl.u32 %v454_v13, 7 }
  0x22   : > { %478 = vmatpush.msra.mxu0 %v475_v2  ;;  %v467_v10 = vld [vmem:[%s902_s21 + $0x30] sm:$0xff]  ;;  %v466_v11 = vld [vmem:[%s902_s21 + $0x28] sm:$0xff]  ;;  %v465_v12 = vld [vmem:[%s902_s21 + $0x20] sm:$0xff] }
  0x23   : > { %v464_v14 = vld [vmem:[%s902_s21 + $0x18] sm:$0xff]  ;;  %v463_v15 = vld [vmem:[%s902_s21 + $0x10] sm:$0xff]  ;;  %v783_v17 = vld [vmem:[%s417_s17] ss:$0 sm:$0xff] }
  0x24   : > { %479 = vmatpush.msra.mxu0 %v474_v3  ;;  %v462_v18 = vld [vmem:[%s902_s21 + $0x8] sm:$0xff]  ;;  %v461_v19 = vld [vmem:[%s902_s21] sm:$0xff]  ;;  %vm457_vm2 = vcmp.eq.s32.totalorder %v455_v16, %v783_v17 }
  0x25   : > { %v460_v21 = vld [vmem:[#allocation2] sm:$0x3] }
  0x26   : > { %480 = vmatpush.msra.mxu0 %v473_v4 }
  0x28   : > { %481 = vmatpush.msra.mxu0 %v472_v5 }
  0x2a   : > { %482 = vmatpush.msra.mxu0 %v471_v6 }
  0x2c   : > { %483 = vmatpush.msra.mxu0 %v470_v7 }
  0x2e   : > { %484 = vmatpush.msra.mxu0 %v469_v8 }
  0x30   : > { %485 = vmatpush.msra.mxu0 %v468_v9 }
  0x32   : > { %486 = vmatpush.msra.mxu0 %v467_v10 }
  0x34   : > { %487 = vmatpush.msra.mxu0 %v466_v11 }
  0x36   : > { %488 = vmatpush.msra.mxu0 %v465_v12 }
  0x38   : > { %489 = vmatpush.msra.mxu0 %v464_v14 }
  0x3a   : > { %490 = vmatpush.msra.mxu0 %v463_v15 }
  0x3c   : > { %491 = vmatpush.msra.mxu0 %v462_v18 }
  0x3e   : > { %492 = vmatpush.msra.mxu0 %v461_v19 }
  0x3f   : > { %751 = vmatmul.msk.f32.vlgmr.msra.gmra.mxu0 %vm457_vm2, %v827_v20 }
  0xbc   : > { %v494_v22 = vpop.f32.mrf.mxu0 }
  0xbd   : > { %v497_v23 = vadd.f32 %v494_v22, %v460_v21 }
  0xbf   : > { %499 = vst.msk [vmem:[#allocation2] sm:$0x3] %vm498_vm3, %v497_v23 }
  0xc0 PF: > { %p752_p9 = scmp.lt.s32.totalorder %s886_s10, 1 }
  0xc2   : > { %503 = sbr.rel (%p752_p9) target bundleno = 360 (0x168), region = 68 }
  0xc7   : > { %v527_v24 = vld [vmem:[%s907_s25 + $0x78] sm:$0xff]  ;;  %v526_v25 = vld [vmem:[%s907_s25 + $0x70] sm:$0xff]  ;;  %v525_v26 = vld [vmem:[%s907_s25 + $0x68] sm:$0xff]  ;;  %v505_v36 = vlaneseq  ;;  %v828_v43 = vmov 1.0   ;;  %vm549_vm5 = vcmask 91136  }
  0xc8   : > { %528 = vmatpush.msra.mxu0 %v527_v24  ;;  %v524_v27 = vld [vmem:[%s907_s25 + $0x60] sm:$0xff]  ;;  %v523_v28 = vld [vmem:[%s907_s25 + $0x58] sm:$0xff]  ;;  %v522_v29 = vld [vmem:[%s907_s25 + $0x50] sm:$0xff] }
  0xc9   : > { %v521_v30 = vld [vmem:[%s907_s25 + $0x48] sm:$0xff]  ;;  %v520_v31 = vld [vmem:[%s907_s25 + $0x40] sm:$0xff]  ;;  %v519_v32 = vld [vmem:[%s907_s25 + $0x38] sm:$0xff]  ;;  %v506_v39 = vshrl.u32 %v505_v36, 7 }
  0xca   : > { %529 = vmatpush.msra.mxu0 %v526_v25  ;;  %v518_v33 = vld [vmem:[%s907_s25 + $0x30] sm:$0xff]  ;;  %v517_v34 = vld [vmem:[%s907_s25 + $0x28] sm:$0xff]  ;;  %v516_v35 = vld [vmem:[%s907_s25 + $0x20] sm:$0xff] }
  0xcb   : > { %v515_v37 = vld [vmem:[%s907_s25 + $0x18] sm:$0xff]  ;;  %v514_v38 = vld [vmem:[%s907_s25 + $0x10] sm:$0xff]  ;;  %v784_v40 = vld [vmem:[%s981_s3] ss:$0 sm:$0xff] }
  0xcc   : > { %530 = vmatpush.msra.mxu0 %v525_v26  ;;  %v513_v41 = vld [vmem:[%s907_s25 + $0x8] sm:$0xff]  ;;  %v512_v42 = vld [vmem:[%s907_s25] sm:$0xff]  ;;  %vm508_vm4 = vcmp.eq.s32.totalorder %v506_v39, %v784_v40 }
  0xcd   : > { %v511_v44 = vld [vmem:[#allocation3] sm:$0x3] }
  0xce   : > { %531 = vmatpush.msra.mxu0 %v524_v27 }
  0xd0   : > { %532 = vmatpush.msra.mxu0 %v523_v28 }
  0xd2   : > { %533 = vmatpush.msra.mxu0 %v522_v29 }
  0xd4   : > { %534 = vmatpush.msra.mxu0 %v521_v30 }
  0xd6   : > { %535 = vmatpush.msra.mxu0 %v520_v31 }
  0xd8   : > { %536 = vmatpush.msra.mxu0 %v519_v32 }
  0xda   : > { %537 = vmatpush.msra.mxu0 %v518_v33 }
  0xdc   : > { %538 = vmatpush.msra.mxu0 %v517_v34 }
  0xde   : > { %539 = vmatpush.msra.mxu0 %v516_v35 }
  0xe0   : > { %540 = vmatpush.msra.mxu0 %v515_v37 }
  0xe2   : > { %541 = vmatpush.msra.mxu0 %v514_v38 }
  0xe4   : > { %542 = vmatpush.msra.mxu0 %v513_v41 }
  0xe6   : > { %543 = vmatpush.msra.mxu0 %v512_v42 }
  0xe7   : > { %754 = vmatmul.msk.f32.vlgmr.msra.gmra.mxu0 %vm508_vm4, %v828_v43 }
 0x164   : > { %v545_v45 = vpop.f32.mrf.mxu0 }
 0x165   : > { %v548_v46 = vadd.f32 %v545_v45, %v511_v44 }
 0x167   : > { %550 = vst.msk [vmem:[#allocation3] sm:$0x3] %vm549_vm5, %v548_v46 }
 0x168 PF: > { %p755_p10 = scmp.ne.s32.totalorder %s886_s10, 1 }
 0x16a   : > { %554 = sbr.rel (%p755_p10) target bundleno = 506 (0x1fa), region = 72 }
 0x16f   : > { %vm564_vm6 = vcmask 1043456   ;;  %v613_v47 = vld [vmem:[%s985_s7] sm:$0xf]  ;;  %vm614_vm7 = vcmask 31744   ;;  %v559_v49 = vld [vmem:[%s984_s6 + $0x8] sm:$0xf] }
 0x170   : > { %v612_v48 = vld [vmem:[%s982_s4] sm:$0x3]  ;;  %759 = vmatpush.msk.msra.mxu2 %vm564_vm6, %v613_v47  ;;  %vm560_vm8 = vcmask 97280   ;;  %vm588_vm9 = vcmask 64512   ;;  %756 = vmatpush.msk.msra.mxu0 %vm564_vm6, %v559_v49  ;;  %v557_v52 = vld [vmem:[#allocation3] sm:$0x3] }
 0x171   : > { %v558_v50 = vld [vmem:[%s984_s6] sm:$0xff]  ;;  %760 = vmatmul.msk.f32.vlgmr.msra.gmra.mxu2 %vm614_vm7, %v612_v48 }
 0x172   : > { %v556_v51 = vld [vmem:[%s983_s5] sm:$0xff]  ;;  %583 = vmatpush.msra.mxu0 %v558_v50 }
 0x173   : > { %v555_v53 = vld [vmem:[#allocation2] sm:$0x3]  ;;  %607 = vmatpush.msra.mxu1 %v556_v51  ;;  %757 = vmatmul.msk.f32.vlgmr.msra.gmra.mxu0 %vm560_vm8, %v557_v52 }
 0x174   : > { %758 = vmatmul.msk.f32.vlgmr.msra.gmra.mxu1 %vm588_vm9, %v555_v53  ;;  %v785_v57 = vld [vmem:[%s986_s8] ss:$0 sm:$0xff] }
 0x1f0   : > { %v585_v55 = vpop.f32.mrf.mxu0 }
 0x1f1   : > { %v609_v54 = vpop.f32.mrf.mxu1 }
 0x1f2   : > { %v610_v56 = vadd.f32 %v609_v54, %v585_v55 }
 0x1f4   : > { %v638_v58 = vpop.f32.mrf.mxu2 }
 0x1f5   : > { %v641_v59 = vadd.f32 %v638_v58, %v610_v56 }
 0x1f7   : > { %v646_v60 = vadd.f32 %v785_v57, %v641_v59 }
 0x1f9   : > { %647 = vst [vmem:[#allocation4] sm:$0x3] %v646_v60 }
 0x1fa PF: > { %p769_p11 = scmp.eq.s32.totalorder %s886_s10, 1  ;;  %s829_s23 = smov [#allocation4]  }
 0x1fb   : > { %s654_s24 = sshll.u32 %s829_s23, 4  ;;  %s656_s27 = sshll.u32 %s987_s9, 4  ;;  %s655_s24 = int_to_ptr.vmem [resolvable:$true] %s654_s24  ;;  %s657_s27 = int_to_ptr.hbm [resolvable:$true] %s656_s27 }
 0x1fc   : > { %766 = dma.vmem_to_hbm [thread:$0]  (%p769_p11), %s655_s24, 32, %s657_s27, [#allocation5]  }
 0x1fd   : > { %819 = dma.done.wait (%p769_p11), [#allocation5], 32  }
 0x1fe   : > { %821 = vsyncadd (%p769_p11), [#allocation5], 4294967264 }
 0x1ff PF: > { %s20_s30 = sadd.s32 1, %s824_s30  }
 0x200   : > { %p17_p12 = scmp.ge.s32.totalorder %s20_s30, 4  }
 0x202   :  { %19 = sbr.rel (!%p17_p12) target bundleno = 1 (0x1), region = 108 }
 0x207   :  { %670 = vsyncpa [#allocation5], 1 }
 0x208   :  { %672 = vsyncpa [#allocation5 + $0x1], 1 }

</bundles_post_ra>
